<compile_context>
chip_gen: v6e
topology: v6e:2x2x1
jax: 0.10.0
libtpu: 0.0.40
codegen_flags: <defaults>
</compile_context>

<pallas_src>
import jax
import jax.numpy as jnp
import numpy as np
from jax import lax
from jax.experimental import pallas as pl
from jax.experimental.pallas import tpu as pltpu

_NEG_BIG = -1e30  # finite "-inf" for the max-pool padding bias


def _round_up(v, m):
    return (v + m - 1) // m * m


def _make_mixed_op_kernel(Wp, Lp):
    """Wp: padded-image row stride, Lp: lane-dense flat output width."""

    def kernel(wmix_ref, x_ref, bias_ref, wconv_ref, o_ref):
        # wmix_ref : SMEM (5,)           mixing weights
        # x_ref    : VMEM (1, C8, Pf)    zero-padded flat input, spatial on lanes
        # bias_ref : VMEM (16, Lp)       pre-shifted per-tap max-pool bias rows
        # wconv_ref: VMEM (3, C8, 3*C8)  conv weight [dy, c_out, dx*C8 + c_in]
        # o_ref    : VMEM (1, C8, Lp)    flat output slab
        C8 = o_ref.shape[1]
        f32 = jnp.float32

        x = x_ref[0].astype(f32)                        # (C8, Pf)

        acc_sum = jnp.zeros((C8, Lp), f32)
        acc_max = jnp.full((C8, Lp), _NEG_BIG, f32)
        conv = jnp.zeros((C8, Lp), f32)
        ident = None
        for dy in range(3):
            cols = []
            for dx in range(3):
                k = dy * 3 + dx
                off = dy * Wp + dx                      # static lane shift
                s = x[:, off:off + Lp]                  # (C8, Lp)
                if (dy, dx) == (1, 1):
                    ident = s                           # reuse center tap
                acc_sum = acc_sum + s
                # pre-shifted bias row: 0 at real pixels, -1e30 at padding
                brow = bias_ref[pl.ds(k, 1), :]         # (1, Lp)
                acc_max = jnp.maximum(acc_max, s + brow)
                cols.append(s)
            # dy-group im2col: one accumulated MXU matmul with K = 3*C8,
            # bf16 operands + f32 accumulate (MXU-native on v6e/v7x).
            col = jnp.concatenate(cols, axis=0).astype(jnp.bfloat16)  # (3*C8, Lp)
            w_dy = wconv_ref[dy].astype(jnp.bfloat16)                 # (C8, 3*C8)
            conv = conv + jnp.dot(w_dy, col, preferred_element_type=f32)

        # Incremental weighted sum (fewer simultaneously-live (C8, Lp) slabs).
        out = wmix_ref[4] * conv
        out = out + (wmix_ref[2] * (1.0 / 9.0)) * acc_sum   # fold avg-pool 1/9
        out = out + wmix_ref[3] * acc_max
        out = out + wmix_ref[1] * ident                     # 'none' op adds 0
        o_ref[0] = out.astype(o_ref.dtype)

    return kernel


def mixed_op(x_nchw, weights, conv_w_oihw):
    """MixedOp forward (is_slim=False path): sum_i w_i * op_i(x).

    x_nchw      : (N, C, H, W)  float32, PyTorch NCHW convention
    weights     : (5,)          mixing weights, one per primitive
    conv_w_oihw : (C, C, 3, 3)  conv weight in PyTorch OIHW layout
    """
    # TODO(synk): is_slim=True path (argmax single-op dispatch via .item()) is
    # Python-level control flow in the original module and is not implemented.
    N, C, H, W = x_nchw.shape

    # Pack groups of samples into the 8-sublane channel group when C is small:
    # stops paying channel-padding HBM DMA and halves grid steps.
    if C < 8 and 8 % C == 0 and N % (8 // C) == 0:
        G = 8 // C
    else:
        G = 1
    Ng, Cp = N // G, G * C
    C8 = _round_up(Cp, 8)

    Wp, Hp = W + 2, H + 2
    L = H * Wp                        # flat output span actually consumed
    Lp = _round_up(L, 128)            # lane-dense output width
    max_off = 2 * Wp + 2              # largest 3x3 tap offset
    need = max_off + Lp
    extra_rows = max(0, -(-(need - Hp * Wp) // Wp))
    Pf = (Hp + extra_rows) * Wp       # flat padded-input width

    # Single-pass pad (channels -> C8, 1 row top / 1+extra rows bottom, 1 col
    # each side) followed by a free contiguous reshape -- no second flat pad.
    xg = x_nchw.reshape(Ng, Cp, H, W)
    xp = jnp.pad(xg, ((0, 0), (0, C8 - Cp), (1, 1 + extra_rows), (1, 1)))
    xf = xp.reshape(Ng, C8, Pf)

    # Pre-shifted per-tap max-pool bias rows (host-side constants, depend only
    # on static shapes): row k is the tap-k shifted view of the validity bias.
    p = np.arange(Pf)
    r, c = p // Wp, p % Wp
    valid = (r >= 1) & (r <= H) & (c >= 1) & (c <= W)
    pb = np.where(valid, 0.0, _NEG_BIG).astype(np.float32)
    bias_taps = np.zeros((16, Lp), np.float32)          # sublane-padded 9 -> 16
    for k, (dy, dx) in enumerate([(a, b) for a in range(3) for b in range(3)]):
        off = dy * Wp + dx
        bias_taps[k] = pb[off:off + Lp]
    bias_taps = jnp.asarray(bias_taps)

    # Conv weight OIHW -> per-sample block-diagonal (for batch packing) ->
    # (3, C8, 3*C8) with layout [dy, c_out, dx*C8 + c_in], matching the
    # kernel's per-dy im2col concat.  Kept f32 in HBM (tiny); cast in-kernel.
    w_hw = jnp.transpose(conv_w_oihw, (2, 3, 0, 1))                    # (3,3,C,C)
    eye_g = jnp.eye(G, dtype=conv_w_oihw.dtype)
    w_blk = jnp.einsum('gh,yxab->yxgahb', eye_g, w_hw).reshape(3, 3, Cp, Cp)
    w_blk = jnp.pad(w_blk, ((0, 0), (0, 0), (0, C8 - Cp), (0, C8 - Cp)))
    wconv = jnp.transpose(w_blk, (0, 2, 1, 3)).reshape(3, C8, 3 * C8)

    out_flat = pl.pallas_call(
        _make_mixed_op_kernel(Wp, Lp),
        out_shape=jax.ShapeDtypeStruct((Ng, C8, Lp), x_nchw.dtype),
        grid=(Ng,),
        in_specs=[
            pl.BlockSpec(memory_space=pltpu.MemorySpace.SMEM),     # mixing w
            pl.BlockSpec((1, C8, Pf), lambda n: (n, 0, 0)),        # x (flat)
            pl.BlockSpec((16, Lp), lambda n: (0, 0)),              # bias taps
            pl.BlockSpec((3, C8, 3 * C8), lambda n: (0, 0, 0)),    # conv taps
        ],
        out_specs=pl.BlockSpec((1, C8, Lp), lambda n: (n, 0, 0)),
        compiler_params=pltpu.CompilerParams(
            dimension_semantics=("parallel",)),                    # megacore
    )(weights, xf, bias_taps, wconv)

    # Crop once at the very end (a downstream cell op could instead consume the
    # padded (Ng, C8, Lp) slab directly and defer this copy).
    # TODO(synk): for production shapes add a halo'd row-tile grid axis and an
    # explicit vmem_limit_bytes budget sized for v7x's 64 MiB VMEM.
    out = out_flat[:, :Cp, :L].reshape(Ng, G, C, H, Wp)[:, :, :, :, :W]
    return out.reshape(N, C, H, W)


def _reference(x, weights, conv_w):
    """Pure-JAX reference matching the PyTorch MixedOp semantics."""
    # TODO(synk): canonical DARTS uses AvgPool2d(count_include_pad=False); this
    # in-script primitive set uses count_include_pad=True (always /9).
    pad = ((0, 0), (0, 0), (1, 1), (1, 1))
    ident = x
    avg = lax.reduce_window(x, 0.0, lax.add, (1, 1, 3, 3), (1, 1, 1, 1), pad) / 9.0
    mx = lax.reduce_window(x, -jnp.inf, lax.max, (1, 1, 3, 3), (1, 1, 1, 1), pad)
    conv = lax.conv_general_dilated(
        x, conv_w, (1, 1), ((1, 1), (1, 1)),
        dimension_numbers=("NCHW", "OIHW", "NCHW"),
        precision=lax.Precision.HIGHEST)
    return (weights[0] * jnp.zeros_like(x) + weights[1] * ident
            + weights[2] * avg + weights[3] * mx + weights[4] * conv)


if __name__ == "__main__":
    key = jax.random.PRNGKey(0)
    k1, k2, k3 = jax.random.split(key, 3)

    N, C, H, W = 2, 4, 16, 16
    x = jax.random.normal(k1, (N, C, H, W), jnp.float32)
    # Architecture mixing weights (one per primitive), e.g. softmax of alphas.
    weights = jax.nn.softmax(jax.random.normal(k2, (5,), jnp.float32))
    # Deterministic conv parameters (3x3, C->C, no bias), fan-in scaled.
    conv_w = jax.random.normal(k3, (C, C, 3, 3), jnp.float32) / jnp.sqrt(9.0 * C)

    out = jax.block_until_ready(mixed_op(x, weights, conv_w))

    ref = _reference(x, weights, conv_w)
    np.testing.assert_allclose(np.asarray(out), np.asarray(ref),
                               rtol=2e-2, atol=2e-2)
    print("KERNEL_OK")
</pallas_src>

<mosaic_0001>
module attributes {stable_mosaic.version = 11 : i64} {
  func.func @kernel(%arg0: i32, %arg1: memref<5xf32, #tpu.memory_space<smem>>, %arg2: memref<1x8x432xf32, #tpu.memory_space<vmem>>, %arg3: memref<16x384xf32, #tpu.memory_space<vmem>>, %arg4: memref<3x8x24xf32, #tpu.memory_space<vmem>>, %arg5: memref<1x8x384xf32, #tpu.memory_space<vmem>>) attributes {dimension_semantics = [#tpu.dimension_semantics<parallel>], iteration_bounds = array<i64: 1>, scalar_prefetch = 0 : i64, scratch_operands = 0 : i64, tpu.core_type = #tpu.core_type<tc>, window_params = [{transform_indices = @transform_0, window_bounds = array<i64: 5>}, {transform_indices = @transform_1, window_bounds = array<i64: 1, 8, 432>}, {pipeline_mode = #tpu.pipeline_mode<synchronous>, transform_indices = @transform_2, window_bounds = array<i64: 16, 384>}, {pipeline_mode = #tpu.pipeline_mode<synchronous>, transform_indices = @transform_3, window_bounds = array<i64: 3, 8, 24>}, {transform_indices = @transform_4, window_bounds = array<i64: 1, 8, 384>}]} {
    %c0 = arith.constant 0 : index
    %c0_0 = arith.constant 0 : index
    %c0_1 = arith.constant 0 : index
    %0 = vector.load %arg2[%c0, %c0_0, %c0_1] : memref<1x8x432xf32, #tpu.memory_space<vmem>>, vector<1x8x432xf32>
    %1 = vector.shape_cast %0 : vector<1x8x432xf32> to vector<8x432xf32>
    %cst = arith.constant 0.000000e+00 : f32
    %2 = vector.broadcast %cst : f32 to vector<8x384xf32>
    %cst_2 = arith.constant -1.000000e+30 : f32
    %3 = vector.broadcast %cst_2 : f32 to vector<8x384xf32>
    %cst_3 = arith.constant 0.000000e+00 : f32
    %4 = vector.broadcast %cst_3 : f32 to vector<8x384xf32>
    %5 = vector.extract_strided_slice %1 {offsets = [0, 0], sizes = [8, 384], strides = [1, 1]} : vector<8x432xf32> to vector<8x384xf32>
    %6 = arith.addf %2, %5 : vector<8x384xf32>
    %c0_4 = arith.constant 0 : index
    %c0_5 = arith.constant 0 : index
    %7 = vector.load %arg3[%c0_4, %c0_5] : memref<16x384xf32, #tpu.memory_space<vmem>>, vector<1x384xf32>
    %8 = vector.broadcast %7 : vector<1x384xf32> to vector<8x384xf32>
    %9 = arith.addf %5, %8 : vector<8x384xf32>
    %10 = arith.maximumf %3, %9 : vector<8x384xf32>
    %11 = vector.extract_strided_slice %1 {offsets = [0, 1], sizes = [8, 384], strides = [1, 1]} : vector<8x432xf32> to vector<8x384xf32>
    %12 = arith.addf %6, %11 : vector<8x384xf32>
    %c1 = arith.constant 1 : index
    %c0_6 = arith.constant 0 : index
    %13 = vector.load %arg3[%c1, %c0_6] : memref<16x384xf32, #tpu.memory_space<vmem>>, vector<1x384xf32>
    %14 = vector.broadcast %13 : vector<1x384xf32> to vector<8x384xf32>
    %15 = arith.addf %11, %14 : vector<8x384xf32>
    %16 = arith.maximumf %10, %15 : vector<8x384xf32>
    %17 = vector.extract_strided_slice %1 {offsets = [0, 2], sizes = [8, 384], strides = [1, 1]} : vector<8x432xf32> to vector<8x384xf32>
    %18 = arith.addf %12, %17 : vector<8x384xf32>
    %c2 = arith.constant 2 : index
    %c0_7 = arith.constant 0 : index
    %19 = vector.load %arg3[%c2, %c0_7] : memref<16x384xf32, #tpu.memory_space<vmem>>, vector<1x384xf32>
    %20 = vector.broadcast %19 : vector<1x384xf32> to vector<8x384xf32>
    %21 = arith.addf %17, %20 : vector<8x384xf32>
    %22 = arith.maximumf %16, %21 : vector<8x384xf32>
    %23 = tpu.concatenate %5, %11, %17 in 0 : vector<8x384xf32>, vector<8x384xf32>, vector<8x384xf32> -> vector<24x384xf32>
    %24 = arith.truncf %23 : vector<24x384xf32> to vector<24x384xbf16>
    %c0_8 = arith.constant 0 : index
    %c0_9 = arith.constant 0 : index
    %c0_10 = arith.constant 0 : index
    %25 = vector.load %arg4[%c0_8, %c0_9, %c0_10] : memref<3x8x24xf32, #tpu.memory_space<vmem>>, vector<1x8x24xf32>
    %26 = vector.shape_cast %25 : vector<1x8x24xf32> to vector<8x24xf32>
    %27 = arith.truncf %26 : vector<8x24xf32> to vector<8x24xbf16>
    %cst_11 = arith.constant dense<0.000000e+00> : vector<8x384xf32>
    %28 = tpu.matmul %27, %24, %cst_11 {dimension_numbers = #tpu.dot_dimension_numbers<[1], [0], [0], [1], [0, 0, 1, 1], [], []>} : vector<8x24xbf16>, vector<24x384xbf16>, vector<8x384xf32> -> vector<8x384xf32>
    %29 = arith.addf %4, %28 : vector<8x384xf32>
    %30 = vector.extract_strided_slice %1 {offsets = [0, 18], sizes = [8, 384], strides = [1, 1]} : vector<8x432xf32> to vector<8x384xf32>
    %31 = arith.addf %18, %30 : vector<8x384xf32>
    %c3 = arith.constant 3 : index
    %c0_12 = arith.constant 0 : index
    %32 = vector.load %arg3[%c3, %c0_12] : memref<16x384xf32, #tpu.memory_space<vmem>>, vector<1x384xf32>
    %33 = vector.broadcast %32 : vector<1x384xf32> to vector<8x384xf32>
    %34 = arith.addf %30, %33 : vector<8x384xf32>
    %35 = arith.maximumf %22, %34 : vector<8x384xf32>
    %36 = vector.extract_strided_slice %1 {offsets = [0, 19], sizes = [8, 384], strides = [1, 1]} : vector<8x432xf32> to vector<8x384xf32>
    %37 = arith.addf %31, %36 : vector<8x384xf32>
    %c4 = arith.constant 4 : index
    %c0_13 = arith.constant 0 : index
    %38 = vector.load %arg3[%c4, %c0_13] : memref<16x384xf32, #tpu.memory_space<vmem>>, vector<1x384xf32>
    %39 = vector.broadcast %38 : vector<1x384xf32> to vector<8x384xf32>
    %40 = arith.addf %36, %39 : vector<8x384xf32>
    %41 = arith.maximumf %35, %40 : vector<8x384xf32>
    %42 = vector.extract_strided_slice %1 {offsets = [0, 20], sizes = [8, 384], strides = [1, 1]} : vector<8x432xf32> to vector<8x384xf32>
    %43 = arith.addf %37, %42 : vector<8x384xf32>
    %c5 = arith.constant 5 : index
    %c0_14 = arith.constant 0 : index
    %44 = vector.load %arg3[%c5, %c0_14] : memref<16x384xf32, #tpu.memory_space<vmem>>, vector<1x384xf32>
    %45 = vector.broadcast %44 : vector<1x384xf32> to vector<8x384xf32>
    %46 = arith.addf %42, %45 : vector<8x384xf32>
    %47 = arith.maximumf %41, %46 : vector<8x384xf32>
    %48 = tpu.concatenate %30, %36, %42 in 0 : vector<8x384xf32>, vector<8x384xf32>, vector<8x384xf32> -> vector<24x384xf32>
    %49 = arith.truncf %48 : vector<24x384xf32> to vector<24x384xbf16>
    %c1_15 = arith.constant 1 : index
    %c0_16 = arith.constant 0 : index
    %c0_17 = arith.constant 0 : index
    %50 = vector.load %arg4[%c1_15, %c0_16, %c0_17] : memref<3x8x24xf32, #tpu.memory_space<vmem>>, vector<1x8x24xf32>
    %51 = vector.shape_cast %50 : vector<1x8x24xf32> to vector<8x24xf32>
    %52 = arith.truncf %51 : vector<8x24xf32> to vector<8x24xbf16>
    %cst_18 = arith.constant dense<0.000000e+00> : vector<8x384xf32>
    %53 = tpu.matmul %52, %49, %cst_18 {dimension_numbers = #tpu.dot_dimension_numbers<[1], [0], [0], [1], [0, 0, 1, 1], [], []>} : vector<8x24xbf16>, vector<24x384xbf16>, vector<8x384xf32> -> vector<8x384xf32>
    %54 = arith.addf %29, %53 : vector<8x384xf32>
    %55 = vector.extract_strided_slice %1 {offsets = [0, 36], sizes = [8, 384], strides = [1, 1]} : vector<8x432xf32> to vector<8x384xf32>
    %56 = arith.addf %43, %55 : vector<8x384xf32>
    %c6 = arith.constant 6 : index
    %c0_19 = arith.constant 0 : index
    %57 = vector.load %arg3[%c6, %c0_19] : memref<16x384xf32, #tpu.memory_space<vmem>>, vector<1x384xf32>
    %58 = vector.broadcast %57 : vector<1x384xf32> to vector<8x384xf32>
    %59 = arith.addf %55, %58 : vector<8x384xf32>
    %60 = arith.maximumf %47, %59 : vector<8x384xf32>
    %61 = vector.extract_strided_slice %1 {offsets = [0, 37], sizes = [8, 384], strides = [1, 1]} : vector<8x432xf32> to vector<8x384xf32>
    %62 = arith.addf %56, %61 : vector<8x384xf32>
    %c7 = arith.constant 7 : index
    %c0_20 = arith.constant 0 : index
    %63 = vector.load %arg3[%c7, %c0_20] : memref<16x384xf32, #tpu.memory_space<vmem>>, vector<1x384xf32>
    %64 = vector.broadcast %63 : vector<1x384xf32> to vector<8x384xf32>
    %65 = arith.addf %61, %64 : vector<8x384xf32>
    %66 = arith.maximumf %60, %65 : vector<8x384xf32>
    %67 = vector.extract_strided_slice %1 {offsets = [0, 38], sizes = [8, 384], strides = [1, 1]} : vector<8x432xf32> to vector<8x384xf32>
    %68 = arith.addf %62, %67 : vector<8x384xf32>
    %c8 = arith.constant 8 : index
    %c0_21 = arith.constant 0 : index
    %69 = vector.load %arg3[%c8, %c0_21] : memref<16x384xf32, #tpu.memory_space<vmem>>, vector<1x384xf32>
    %70 = vector.broadcast %69 : vector<1x384xf32> to vector<8x384xf32>
    %71 = arith.addf %67, %70 : vector<8x384xf32>
    %72 = arith.maximumf %66, %71 : vector<8x384xf32>
    %73 = tpu.concatenate %55, %61, %67 in 0 : vector<8x384xf32>, vector<8x384xf32>, vector<8x384xf32> -> vector<24x384xf32>
    %74 = arith.truncf %73 : vector<24x384xf32> to vector<24x384xbf16>
    %c2_22 = arith.constant 2 : index
    %c0_23 = arith.constant 0 : index
    %c0_24 = arith.constant 0 : index
    %75 = vector.load %arg4[%c2_22, %c0_23, %c0_24] : memref<3x8x24xf32, #tpu.memory_space<vmem>>, vector<1x8x24xf32>
    %76 = vector.shape_cast %75 : vector<1x8x24xf32> to vector<8x24xf32>
    %77 = arith.truncf %76 : vector<8x24xf32> to vector<8x24xbf16>
    %cst_25 = arith.constant dense<0.000000e+00> : vector<8x384xf32>
    %78 = tpu.matmul %77, %74, %cst_25 {dimension_numbers = #tpu.dot_dimension_numbers<[1], [0], [0], [1], [0, 0, 1, 1], [], []>} : vector<8x24xbf16>, vector<24x384xbf16>, vector<8x384xf32> -> vector<8x384xf32>
    %79 = arith.addf %54, %78 : vector<8x384xf32>
    %c4_26 = arith.constant 4 : index
    %80 = memref.load %arg1[%c4_26] : memref<5xf32, #tpu.memory_space<smem>>
    %81 = vector.broadcast %80 : f32 to vector<8x384xf32>
    %82 = arith.mulf %81, %79 : vector<8x384xf32>
    %c2_27 = arith.constant 2 : index
    %83 = memref.load %arg1[%c2_27] : memref<5xf32, #tpu.memory_space<smem>>
    %cst_28 = arith.constant 0.111111112 : f32
    %84 = arith.mulf %83, %cst_28 : f32
    %85 = vector.broadcast %84 : f32 to vector<8x384xf32>
    %86 = arith.mulf %85, %68 : vector<8x384xf32>
    %87 = arith.addf %82, %86 : vector<8x384xf32>
    %c3_29 = arith.constant 3 : index
    %88 = memref.load %arg1[%c3_29] : memref<5xf32, #tpu.memory_space<smem>>
    %89 = vector.broadcast %88 : f32 to vector<8x384xf32>
    %90 = arith.mulf %89, %72 : vector<8x384xf32>
    %91 = arith.addf %87, %90 : vector<8x384xf32>
    %c1_30 = arith.constant 1 : index
    %92 = memref.load %arg1[%c1_30] : memref<5xf32, #tpu.memory_space<smem>>
    %93 = vector.broadcast %92 : f32 to vector<8x384xf32>
    %94 = arith.mulf %93, %36 : vector<8x384xf32>
    %95 = arith.addf %91, %94 : vector<8x384xf32>
    %c0_31 = arith.constant 0 : index
    %c0_32 = arith.constant 0 : index
    %c0_33 = arith.constant 0 : index
    %96 = vector.load %arg5[%c0_31, %c0_32, %c0_33] : memref<1x8x384xf32, #tpu.memory_space<vmem>>, vector<1x8x384xf32>
    %97 = vector.shape_cast %96 : vector<1x8x384xf32> to vector<8x384xf32>
    %98 = vector.shape_cast %95 : vector<8x384xf32> to vector<1x8x384xf32>
    tpu.vector_store %arg5[%c0_31, %c0_32, %c0_33], %98 {strides = array<i32>} : memref<1x8x384xf32, #tpu.memory_space<vmem>>, vector<1x8x384xf32>,
    return
  }
  func.func @transform_0(%arg0: i32) -> i32 {
    %c0_i32 = arith.constant 0 : i32
    %c0_i32_0 = arith.constant 0 : i32
    return %c0_i32 : i32
  }
  func.func @transform_1(%arg0: i32) -> (i32, i32, i32) {
    %c0_i32 = arith.constant 0 : i32
    %c0_i32_0 = arith.constant 0 : i32
    %c0_i32_1 = arith.constant 0 : i32
    return %arg0, %c0_i32, %c0_i32_0 : i32, i32, i32
  }
  func.func @transform_2(%arg0: i32) -> (i32, i32) {
    %c0_i32 = arith.constant 0 : i32
    %c0_i32_0 = arith.constant 0 : i32
    %c0_i32_1 = arith.constant 0 : i32
    return %c0_i32, %c0_i32_0 : i32, i32
  }
  func.func @transform_3(%arg0: i32) -> (i32, i32, i32) {
    %c0_i32 = arith.constant 0 : i32
    %c0_i32_0 = arith.constant 0 : i32
    %c0_i32_1 = arith.constant 0 : i32
    %c0_i32_2 = arith.constant 0 : i32
    return %c0_i32, %c0_i32_0, %c0_i32_1 : i32, i32, i32
  }
  func.func @transform_4(%arg0: i32) -> (i32, i32, i32) {
    %c0_i32 = arith.constant 0 : i32
    %c0_i32_0 = arith.constant 0 : i32
    %c0_i32_1 = arith.constant 0 : i32
    return %arg0, %c0_i32, %c0_i32_0 : i32, i32, i32
  }
}

</mosaic_0001>

<bundles_post_ra>
// kernel: tpu_custom_call.1
= control target key start
LH: loop header
LB: loop body
LE: loop exit
PB: predicated region body
PF: predicated region fallthrough
CT: control target
= control target key end

     0   :  { %9 = vsyncpa [#allocation5], 0  ;;  %s1767_s0 = inlined_call_operand.hbm [shape: f32[5], index: 0, kind: input, shape index: {}]   ;;  %s1768_s1 = inlined_call_operand.hbm [shape: f32[1,8,432], index: 1, kind: input, shape index: {}]   ;;  %s1769_s2 = inlined_call_operand.hbm [shape: f32[16,384], index: 2, kind: input, shape index: {}]   ;;  %s1770_s3 = inlined_call_operand.hbm [shape: f32[3,8,24], index: 3, kind: input, shape index: {}]   ;;  %s1771_s4 = inlined_call_operand.hbm [shape: f32[1,8,384], index: 4, kind: output, shape index: {}]  }
   0x1   :  { %10 = vsyncpa [#allocation3], 0 }
   0x2   :  { %11 = vsyncpa [#allocation8], 0 }
   0x3   :  { %12 = vsyncpa [#allocation4], 0  ;;  %s1272_s15 = smov [#allocation7]  }
   0x4   :  { %s36_s16 = sshll.u32 %s1272_s15, 4  ;;  %s37_s16 = int_to_ptr.vmem [resolvable:$true] %s36_s16 }
   0x5   :  { %s1184_s17 = scalar_lea.vmem %s37_s16, 768  ;;  %p1189_p1 = scmp.lt.s32.totalorder %s37_s16, %s37_s16 }
   0x6   :  { %p1185_p0 = scmp.ne.s32.totalorder %s37_s16, %s1184_s17  ;;  %p1190_p2 = scmp.lt.s32.totalorder %s1184_s17, %s1184_s17 }
   0x8   :  { %p1191_p3 = por %p1190_p2, %p1189_p1 }
   0xa   :  { %p1192_p4 = pnand %p1191_p3, %p1185_p0 }
   0xc   :  { %1195 = shalt.err (!%p1192_p4)
}
   0xd   :  { %s1273_s18 = smov 384   ;;  %s1274_s19 = smov 24  }
   0xe   :  { %42 = dma.hbm_to_vmem [thread:$0]  %s1769_s2, 768, %s37_s16, [#allocation8], %s1273_s18, %s1273_s18, %s1274_s19  }
   0xf   :  { %s1275_s22 = smov [#allocation2]   ;;  %s1276_s25 = smov [#allocation6]  }
  0x10   :  { %20 = dma.hbm_to_smem %s1767_s0, 16, %s1275_s22, [#allocation5]  }
  0x11   :  { %s27_s26 = sshll.u32 %s1276_s25, 4  ;;  %s1277_s27 = smov [#allocation9]   ;;  %s28_s26 = int_to_ptr.vmem [resolvable:$true] %s27_s26 }
  0x12   :  { %s48_s28 = sshll.u32 %s1277_s27, 4  ;;  %s1212_s29 = scalar_lea.vmem %s28_s26, 512  ;;  %s49_s28 = int_to_ptr.vmem [resolvable:$true] %s48_s28 }
  0x13   :  { %p1213_p5 = scmp.ne.s32.totalorder %s28_s26, %s1212_s29  ;;  %p1217_p6 = scmp.lt.s32.totalorder %s28_s26, %s28_s26 }
  0x14   :  { %p1218_p7 = scmp.lt.s32.totalorder %s1212_s29, %s1212_s29 }
  0x16   :  { %p1219_p8 = por %p1218_p7, %p1217_p6 }
  0x18   :  { %p1220_p9 = pnand %p1219_p8, %p1213_p5 }
  0x1a   :  { %1223 = shalt.err (!%p1220_p9)
}
  0x1b   :  { %30 = dma.hbm_to_vmem [thread:$0]  %s1768_s1, 512, %s28_s26, [#allocation3]  }
  0x1c   :  { %s1232_s5 = scalar_lea.vmem %s49_s28, 384  ;;  %p1237_p11 = scmp.lt.s32.totalorder %s49_s28, %s49_s28 }
  0x1d   :  { %p1233_p10 = scmp.ne.s32.totalorder %s49_s28, %s1232_s5  ;;  %p1238_p12 = scmp.lt.s32.totalorder %s1232_s5, %s1232_s5 }
  0x1f   :  { %p1239_p13 = por %p1238_p12, %p1237_p11 }
  0x21   :  { %p1240_p0 = pnand %p1239_p13, %p1233_p10 }
  0x23   :  { %1243 = shalt.err (!%p1240_p0)
}
  0x24   :  { %s1278_s0 = smov 128   ;;  %s1279_s6 = smov 8  }
  0x25   :  { %54 = dma.hbm_to_vmem [thread:$0]  %s1770_s3, 384, %s49_s28, [#allocation8], %s1278_s0, %s1278_s0, %s1279_s6  }
  0x26   :  { %1264 = dma.done.wait [#allocation5], 16  }
  0x27   :  { %1265 = vsyncadd [#allocation5], 4294967280 }
  0x28   :  { %1266 = dma.done.wait [#allocation3], 512  }
  0x29   :  { %1267 = vsyncadd [#allocation3], 4294966784 }
  0x2a   :  { %1268 = dma.done.wait [#allocation8], 1152  }
  0x2b   :  { %1269 = vsyncadd [#allocation8], 4294966144 }
  0x2c   :  { %67 = sfence }
  0x2d   :  { %v1337_v0 = vld [vmem:[#allocation6 + $0x10] sm:$0xff]  ;;  %v1339_v1 = vld [vmem:[#allocation6] sm:$0xff]  ;;  %s1280_s1 = smov 126   ;;  %v1345_v2 = vld [vmem:[#allocation6 + $0x18] sm:$0xff]  ;;  %s1281_s3 = smov 127   ;;  %v1282_v6 = vmov 0.0   ;;  %v78_v34 = vlaneseq }
  0x2e   :  { %178 = vrot.lane.b32.xlu1 %v1337_v0, %s1280_s1  ;;  %174 = vrot.lane.b32.xlu0 %v1339_v1, %s1280_s1  ;;  %v1347_v3 = vld [vmem:[#allocation6 + $0x8] sm:$0xff]  ;;  %vm182_vm0 = vcmask 1031168   ;;  %vm111_vm1 = vcmask 1039360   ;;  %s1283_s9 = smov 110   ;;  %v1284_v20 = vmov 0   ;;  %vm1285_vm2 = vmmov 0  }
  0x2f   :  { %1124 = vmatprep.subr.bf16.mxu1 %v1282_v6  ;;  %553 = vmatprep.mubr.bf16.mxu0 %v1284_v20  ;;  %s1286_s10 = smov 92   ;;  %v79_v35 = vshrl.u32 %v78_v34, 7  ;;  %v122_v38 = vld [vmem:[#allocation7 + $0x1] ss:$8 sm:$0x7]  ;;  %s1287_s11 = smov 1  }
  0x30   :  { %1128 = vmatprep.mubr.msk.bf16.mxu1 %vm1285_vm2, %v1282_v6  ;;  %v193_v42 = vld [vmem:[#allocation7 + $0x2] ss:$8 sm:$0x7]  ;;  %s1288_s12 = smov 2   ;;  %s1289_s13 = smov 18   ;;  %vm261_vm3 = vcmask 900096  }
  0x31   :  { %v1421_v36 = vsub.s32 0, %v79_v35  ;;  %v1423_v37 = vsub.s32 1, %v79_v35  ;;  %v1430_v41 = vsub.s32 2, %v79_v35  ;;  %v272_v47 = vld [vmem:[#allocation7 + $0x3] ss:$8 sm:$0x7] }
  0x32   :  { %180 = vrot.lane.b32.xlu1 %v1345_v2, %s1280_s1  ;;  %176 = vrot.lane.b32.xlu0 %v1347_v3, %s1280_s1  ;;  %v343_v51 = vld [vmem:[#allocation7 + $0x4] ss:$8 sm:$0x7]  ;;  %v414_v54 = vld [vmem:[#allocation7 + $0x5] ss:$8 sm:$0x7] }
  0x33   :  { %v127_v39 = vrot.slane %v122_v38, %v1421_v36  ;;  %v131_v40 = vrot.slane %v122_v38, %v1423_v37  ;;  %v135_v43 = vrot.slane %v122_v38, %v1430_v41  ;;  %v198_v44 = vrot.slane %v193_v42, %v1421_v36  ;;  %s1290_s14 = smov 19   ;;  %s1291_s15 = smov 20   ;;  %v714_v59 = vld [vmem:[#allocation7 + $0x6] ss:$8 sm:$0x7]  ;;  %v471_v34 = vld [vmem:[#allocation9 + $0x8] sm:$0xff] }
  0x34   :  { %v202_v45 = vrot.slane %v193_v42, %v1423_v37  ;;  %v206_v46 = vrot.slane %v193_v42, %v1430_v41  ;;  %v277_v48 = vrot.slane %v272_v47, %v1421_v36  ;;  %v281_v49 = vrot.slane %v272_v47, %v1423_v37  ;;  %v785_v62 = vld [vmem:[#allocation7 + $0x7] ss:$8 sm:$0x7]  ;;  %s1292_s16 = smov 36   ;;  %s1293_s17 = smov 37  }
  0x35   :  { %v285_v50 = vrot.slane %v272_v47, %v1430_v41  ;;  %v348_v52 = vrot.slane %v343_v51, %v1421_v36  ;;  %v352_v53 = vrot.slane %v343_v51, %v1423_v37  ;;  %v356_v55 = vrot.slane %v343_v51, %v1430_v41  ;;  %s1294_s18 = smov 38   ;;  %v251_v47 = vld [vmem:[#allocation9] sm:$0xff]  ;;  %s1295_s19 = smov 109  }
  0x36   :  { %107 = vrot.lane.b32.xlu1 %v1337_v0, %s1281_s3  ;;  %105 = vrot.lane.b32.xlu0 %v1347_v3, %s1281_s3  ;;  %v419_v56 = vrot.slane %v414_v54, %v1421_v36  ;;  %v423_v57 = vrot.slane %v414_v54, %v1423_v37  ;;  %v427_v58 = vrot.slane %v414_v54, %v1430_v41  ;;  %vm511_vm4 = vcmask 1043456   ;;  %s1296_s20 = smov 108   ;;  %s1297_s21 = smov 91  }
  0x37   :  { %v719_v60 = vrot.slane %v714_v59, %v1421_v36  ;;  %v723_v61 = vrot.slane %v714_v59, %v1423_v37  ;;  %v727_v63 = vrot.slane %v714_v59, %v1430_v41  ;;  %v472_v42 = vpack.c.bf16 %v471_v34, %v471_v34  ;;  %s1298_s22 = smov 90   ;;  %s1114_s23 = sld [smem:[#allocation2 + $0x1]] }
  0x38   :  { %vm507_vm5 = vcmask 195584   ;;  %vm703_vm6 = vcmask 752640   ;;  %vm142_vm7 = vcmask 7168   ;;  %vm213_vm8 = vcmask 15360   ;;  %s1112_s24 = sld [smem:[#allocation2 + $0x2]]  ;;  %s1299_s28 = smov [#allocation10]  }
  0x39   :  { %vm292_vm9 = vcmask 146432   ;;  %vm363_vm10 = vcmask 154624   ;;  %vm434_vm11 = vcmask 162816   ;;  %vm734_vm12 = vcmask 293888   ;;  %s1111_s25 = sld [smem:[#allocation2 + $0x4]]  ;;  %s1091_s29 = sshll.u32 %s1299_s28, 4  ;;  %s1092_s29 = int_to_ptr.vmem [resolvable:$true] %s1091_s29 }
  0x3a   :  { %103 = vrot.lane.b32.xlu1 %v1339_v1, %s1281_s3  ;;  %109 = vrot.lane.b32.xlu0 %v1345_v2, %s1281_s3  ;;  %vm805_vm13 = vcmask 302080   ;;  %vm876_vm14 = vcmask 310272   ;;  %vm332_vm15 = vcmask 891904   ;;  %s1717_s27 = sld [smem:[#allocation2 + $0x3]]  ;;  %s1244_s30 = scalar_lea.vmem %s1092_s29, 384 }
  0x3b   :  { %p1245_p1 = scmp.ne.s32.totalorder %s1092_s29, %s1244_s30  ;;  %p1249_p2 = scmp.lt.s32.totalorder %s1092_s29, %s1092_s29 }
  0x3c   :  { %p1250_p3 = scmp.lt.s32.totalorder %s1244_s30, %s1244_s30 }
  0x3e   :  { %s1039_s26 = smul.f32 0.11111111, %s1112_s24  ;;  %p1251_p4 = por %p1250_p3, %p1249_p2 }
  0x40   :  { %p1252_p5 = pnand %p1251_p4, %p1245_p1 }
  0xa0   :  { %v179_v4 = vpop.permute.xlu1 %178  ;;  %v175_v5 = vpop.permute.xlu0 %174 }
  0xa4   :  { %v181_v7 = vpop.permute.xlu1 %180  ;;  %v177_v8 = vpop.permute.xlu0 %176 }
  0xa5   :  { %v469_v9 = vpack.c.bf16 %v181_v7, %v181_v7  ;;  %v183_v10 = vsel %vm182_vm0, %v175_v5, %v177_v8  ;;  %v184_v11 = vsel %vm182_vm0, %v177_v8, %v179_v4  ;;  %v185_v13 = vsel %vm182_vm0, %v179_v4, %v181_v7  ;;  %v856_v8 = vld [vmem:[#allocation7 + $0x18] ss:$8 sm:$0x7] }
  0xa6   :  { %v1364_v12 = vpack.c.bf16 %v183_v10, %v183_v10  ;;  %v1371_v17 = vpack.c.bf16 %v184_v11, %v184_v11  ;;  %v1374_v19 = vpack.c.bf16 %v185_v13, %v185_v13  ;;  %v790_v4 = vrot.slane %v785_v62, %v1421_v36 }
  0xa7   :  { %495 = vrot.lane.b32.xlu1 %v469_v9, %s1283_s9  ;;  %v794_v5 = vrot.slane %v785_v62, %v1423_v37  ;;  %v798_v7 = vrot.slane %v785_v62, %v1430_v41 }
  0xa8   :  { %v108_v14 = vpop.permute.xlu1 %107  ;;  %489 = vrot.lane.b32.xlu0 %v1364_v12, %s1283_s9  ;;  %v106_v15 = vpop.permute.xlu0 %105 }
  0xa9   :  { %v113_v16 = vsel %vm111_vm1, %v106_v15, %v108_v14 }
  0xaa   :  { %v119_v18 = vadd.f32 %v113_v16, %v1347_v3  ;;  %v1390_v28 = vpack.c.bf16 %v113_v16, %v1347_v3 }
  0xab   :  { %491 = vrot.lane.b32.xlu1 %v1371_v17, %s1283_s9 }
  0xac   :  { %v104_v21 = vpop.permute.xlu1 %103  ;;  %493 = vrot.lane.b32.xlu0 %v1374_v19, %s1283_s9  ;;  %v110_v22 = vpop.permute.xlu0 %109  ;;  %v1383_v23 = vadd.f32 %v184_v11, %v119_v18  ;;  %v869_v11 = vrot.slane %v856_v8, %v1430_v41 }
  0xad   :  { %v112_v24 = vsel %vm111_vm1, %v104_v21, %v106_v15  ;;  %v114_v25 = vsel %vm111_vm1, %v108_v14, %v110_v22  ;;  %v468_v33 = vpack.c.bf16 %v110_v22, %v1345_v2 }
  0xae   :  { %v118_v26 = vadd.f32 %v112_v24, %v1339_v1  ;;  %v120_v27 = vadd.f32 %v114_v25, %v1337_v0  ;;  %v1393_v29 = vpack.c.bf16 %v114_v25, %v1337_v0  ;;  %v1404_v32 = vpack.c.bf16 %v112_v24, %v1339_v1 }
  0xb0   :  { %483 = vrot.lane.b32.xlu0 %v1390_v28, %s1283_s9  ;;  %485 = vrot.lane.b32.xlu1 %v1393_v29, %s1283_s9  ;;  %v1399_v30 = vadd.f32 %v183_v10, %v118_v26  ;;  %v1401_v31 = vadd.f32 %v185_v13, %v120_v27  ;;  %v865_v10 = vrot.slane %v856_v8, %v1423_v37 }
  0xb4   :  { %481 = vrot.lane.b32.xlu0 %v1404_v32, %s1283_s9  ;;  %487 = vrot.lane.b32.xlu1 %v468_v33, %s1283_s9 }
  0xb8   :  { %919 = vrot.lane.b32.xlu0 %v1364_v12, %s1286_s10  ;;  %925 = vrot.lane.b32.xlu1 %v469_v9, %s1286_s10  ;;  %v861_v9 = vrot.slane %v856_v8, %v1421_v36 }
  0xbc   :  { %923 = vrot.lane.b32.xlu0 %v1374_v19, %s1286_s10  ;;  %921 = vrot.lane.b32.xlu1 %v1371_v17, %s1286_s10 }
  0xc0   :  { %913 = vrot.lane.b32.xlu0 %v1390_v28, %s1286_s10  ;;  %915 = vrot.lane.b32.xlu1 %v1393_v29, %s1286_s10 }
  0xc4   :  { %911 = vrot.lane.b32.xlu0 %v1404_v32, %s1286_s10  ;;  %917 = vrot.lane.b32.xlu1 %v468_v33, %s1286_s10 }
  0xc8   :  { %136 = vrot.lane.b32.xlu0 %v127_v39, %s1287_s11  ;;  %138 = vrot.lane.b32.xlu1 %v131_v40, %s1287_s11 }
  0xcc   :  { %140 = vrot.lane.b32.xlu0 %v135_v43, %s1287_s11  ;;  %207 = vrot.lane.b32.xlu1 %v198_v44, %s1288_s12 }
  0xd0   :  { %209 = vrot.lane.b32.xlu0 %v202_v45, %s1288_s12  ;;  %211 = vrot.lane.b32.xlu1 %v206_v46, %s1288_s12  ;;  %v606_v45 = vsel %vm511_vm4, %v1364_v12, 0  ;;  %v612_v46 = vsel %vm511_vm4, %v1374_v19, 0 }
  0xd4   :  { %253 = vrot.lane.b32.xlu0 %v1339_v1, %s1283_s9  ;;  %286 = vrot.lane.b32.xlu1 %v277_v48, %s1289_s13 }
  0xd8   :  { %288 = vrot.lane.b32.xlu0 %v281_v49, %s1289_s13  ;;  %290 = vrot.lane.b32.xlu1 %v285_v50, %s1289_s13  ;;  %v252_v49 = vpack.c.bf16 %v251_v47, %v251_v47 }
  0xdc   :  { %357 = vrot.lane.b32.xlu0 %v348_v52, %s1290_s14  ;;  %359 = vrot.lane.b32.xlu1 %v352_v53, %s1290_s14 }
  0xe0   :  { %361 = vrot.lane.b32.xlu0 %v356_v55, %s1290_s14  ;;  %428 = vrot.lane.b32.xlu1 %v419_v56, %s1291_s15 }
  0xe4   :  { %430 = vrot.lane.b32.xlu0 %v423_v57, %s1291_s15  ;;  %432 = vrot.lane.b32.xlu1 %v427_v58, %s1291_s15 }
  0xe8   :  { %728 = vrot.lane.b32.xlu0 %v719_v60, %s1292_s16  ;;  %730 = vrot.lane.b32.xlu1 %v723_v61, %s1292_s16 }
  0xec   :  { %732 = vrot.lane.b32.xlu0 %v727_v63, %s1292_s16  ;;  %799 = vrot.lane.b32.xlu1 %v790_v4, %s1293_s17 }
  0xf0   :  { %801 = vrot.lane.b32.xlu0 %v794_v5, %s1293_s17  ;;  %803 = vrot.lane.b32.xlu1 %v798_v7, %s1293_s17 }
  0xf4   :  { %870 = vrot.lane.b32.xlu0 %v861_v9, %s1294_s18  ;;  %872 = vrot.lane.b32.xlu1 %v865_v10, %s1294_s18 }
  0xf8   :  { %874 = vrot.lane.b32.xlu0 %v869_v11, %s1294_s18  ;;  %255 = vrot.lane.b32.xlu1 %v1347_v3, %s1283_s9 }
  0xfc   :  { %257 = vrot.lane.b32.xlu0 %v1337_v0, %s1283_s9  ;;  %259 = vrot.lane.b32.xlu1 %v1345_v2, %s1283_s9 }
 0x119   :  { %v496_v13 = vpop.permute.xlu1 %495 }
 0x11a   :  { %v490_v14 = vpop.permute.xlu0 %489 }
 0x11d   :  { %v492_v15 = vpop.permute.xlu1 %491 }
 0x11e   :  { %v494_v16 = vpop.permute.xlu0 %493  ;;  %v501_v18 = vsel %vm261_vm3, %v490_v14, %v492_v15 }
 0x11f   :  { %v502_v21 = vsel %vm261_vm3, %v492_v15, %v494_v16  ;;  %v513_v22 = vsel %vm511_vm4, %v501_v18, 0  ;;  %v503_v24 = vsel %vm261_vm3, %v494_v16, %v496_v13 }
 0x120   :  { %1102 = vmatprep.subr.msk.bf16.mxu0 %vm511_vm4, %v502_v21  ;;  %v519_v25 = vsel %vm511_vm4, %v503_v24, 0 }
 0x121   :  { %534 = vmatpush1.bf16.msra.mxu0 %v513_v22  ;;  %1125 = vmatpush3.bf16.msra.mxu1 %v519_v25 }
 0x122   :  { %v486_v26 = vpop.permute.xlu1 %485  ;;  %v484_v27 = vpop.permute.xlu0 %483  ;;  %1126 = vmatprep.subr.bf16.mxu1 %v1282_v6 }
 0x123   :  { %v499_v33 = vsel %vm261_vm3, %v484_v27, %v486_v26 }
 0x124   :  { %535 = vmatprep.subr.bf16.mxu0 %v499_v33 }
 0x126   :  { %v488_v35 = vpop.permute.xlu1 %487  ;;  %v482_v38 = vpop.permute.xlu0 %481 }
 0x127   :  { %v498_v39 = vsel %vm261_vm3, %v482_v38, %v484_v27  ;;  %v500_v40 = vsel %vm261_vm3, %v486_v26, %v488_v35 }
 0x128   :  { %536 = vmatpush1.bf16.msra.mxu0 %v498_v39  ;;  %1127 = vmatpush3.bf16.msra.mxu1 %v500_v40 }
 0x129   :  { %1105 = vmatprep.subr.msk.bf16.mxu0 %vm511_vm4, %v1371_v17  ;;  %1132 = vmatprep.subr.bf16.mxu1 %v1282_v6 }
 0x12a   :  { %v926_v43 = vpop.permute.xlu1 %925  ;;  %v920_v44 = vpop.permute.xlu0 %919 }
 0x12b   :  { %1103 = vmatmul.mubr.msk.bf16.vlgmr.msra.gmra.mxu0 %vm507_vm5, %v472_v42  ;;  %1129 = vmatmul.mubr.msk.bf16.vlgmr.msra.gmra.mxu1 %vm507_vm5, %v472_v42 }
 0x12c   :  { %627 = vmatpush1.bf16.msra.mxu0 %v606_v45  ;;  %1133 = vmatpush3.bf16.msra.mxu1 %v612_v46 }
 0x12d   :  { %628 = vmatprep.subr.bf16.mxu0 %v1390_v28  ;;  %1134 = vmatprep.subr.bf16.mxu1 %v1282_v6 }
 0x12e   :  { %v922_v17 = vpop.permute.xlu1 %921  ;;  %v924_v48 = vpop.permute.xlu0 %923  ;;  %646 = vmatprep.mubr.bf16.mxu0 %v1284_v20  ;;  %1136 = vmatprep.mubr.msk.bf16.mxu1 %vm1285_vm2, %v1282_v6 }
 0x12f   :  { %v932_v12 = vsel %vm703_vm6, %v922_v17, %v924_v48  ;;  %v931_v19 = vsel %vm703_vm6, %v920_v44, %v922_v17  ;;  %v933_v50 = vsel %vm703_vm6, %v924_v48, %v926_v43 }
 0x130   :  { %629 = vmatpush1.bf16.msra.mxu0 %v1404_v32  ;;  %1135 = vmatpush3.bf16.msra.mxu1 %v1393_v29  ;;  %v941_v52 = vsel %vm511_vm4, %v931_v19, 0  ;;  %v947_v53 = vsel %vm511_vm4, %v933_v50, 0  ;;  %v909_v32 = vld [vmem:[#allocation9 + $0x10] sm:$0xff] }
 0x131   :  { %1108 = vmatprep.subr.msk.bf16.mxu0 %vm511_vm4, %v932_v12  ;;  %1140 = vmatprep.subr.bf16.mxu1 %v1282_v6  ;;  %v910_v58 = vpack.c.bf16 %v909_v32, %v909_v32 }
 0x132   :  { %v916_v28 = vpop.permute.xlu1 %915  ;;  %v914_v51 = vpop.permute.xlu0 %913 }
 0x133   :  { %1106 = vmatmul.mubr.msk.bf16.vlgmr.msra.gmra.mxu0 %vm507_vm5, %v252_v49  ;;  %1137 = vmatmul.mubr.msk.bf16.vlgmr.msra.gmra.mxu1 %vm507_vm5, %v252_v49  ;;  %v929_v54 = vsel %vm703_vm6, %v914_v51, %v916_v28 }
 0x134   :  { %962 = vmatpush1.bf16.msra.mxu0 %v941_v52  ;;  %1141 = vmatpush3.bf16.msra.mxu1 %v947_v53 }
 0x135   :  { %963 = vmatprep.subr.bf16.mxu0 %v929_v54  ;;  %1142 = vmatprep.subr.bf16.mxu1 %v1282_v6 }
 0x136   :  { %v918_v29 = vpop.permute.xlu1 %917  ;;  %v912_v55 = vpop.permute.xlu0 %911  ;;  %981 = vmatprep.mubr.bf16.mxu0 %v1284_v20  ;;  %1144 = vmatprep.mubr.msk.bf16.mxu1 %vm1285_vm2, %v1282_v6  ;;  %vm845_vm2 = vcmask 736256  }
 0x137   :  { %v930_v56 = vsel %vm703_vm6, %v916_v28, %v918_v29  ;;  %v928_v57 = vsel %vm703_vm6, %v912_v55, %v914_v51 }
 0x138   :  { %964 = vmatpush1.bf16.msra.mxu0 %v928_v57  ;;  %1143 = vmatpush3.bf16.msra.mxu1 %v930_v56 }
 0x13a   :  { %v139_v59 = vpop.permute.xlu1 %138  ;;  %v137_v60 = vpop.permute.xlu0 %136 }
 0x13b   :  { %v149_v61 = vadd.f32 %v137_v60, %v1339_v1  ;;  %1109 = vmatmul.mubr.msk.bf16.vlgmr.msra.gmra.mxu0 %vm507_vm5, %v910_v58  ;;  %1145 = vmatmul.mubr.msk.bf16.vlgmr.msra.gmra.mxu1 %vm507_vm5, %v910_v58  ;;  %v143_v11 = vsel %vm142_vm7, %v137_v60, %v139_v59 }
 0x13c   :  { %v150_v15 = vadd.f32 %v143_v11, %v1347_v3 }
 0x13d   :  { %157 = vrot.lane.b32.xlu1 %v149_v61, %s1281_s3 }
 0x13e   :  { %v208_v20 = vpop.permute.xlu1 %207  ;;  %v141_v62 = vpop.permute.xlu0 %140 }
 0x13f   :  { %v152_v6 = vadd.f32 %v141_v62, %v1345_v2  ;;  %v220_v5 = vadd.f32 %v208_v20, %v1339_v1  ;;  %v144_v18 = vsel %vm142_vm7, %v139_v59, %v141_v62 }
 0x140   :  { %v151_v25 = vadd.f32 %v144_v18, %v1337_v0 }
 0x141   :  { %163 = vrot.lane.b32.xlu0 %v152_v6, %s1281_s3 }
 0x142   :  { %v212_v63 = vpop.permute.xlu1 %211  ;;  %v210_v4 = vpop.permute.xlu0 %209 }
 0x143   :  { %v223_v7 = vadd.f32 %v212_v63, %v1345_v2  ;;  %v215_v21 = vsel %vm213_vm8, %v210_v4, %v212_v63  ;;  %v214_v27 = vsel %vm213_vm8, %v208_v20, %v210_v4 }
 0x144   :  { %v222_v26 = vadd.f32 %v215_v21, %v1337_v0  ;;  %v221_v38 = vadd.f32 %v214_v27, %v1347_v3  ;;  %v1056_v27 = vstv %s1114_s23 }
 0x145   :  { %234 = vrot.lane.b32.xlu1 %v223_v7, %s1280_s1  ;;  %228 = vrot.lane.b32.xlu0 %v220_v5, %s1280_s1 }
 0x146   :  { %v287_v8 = vpop.permute.xlu1 %286  ;;  %v1514_v9 = vpop.permute.xlu0 %253 }
 0x147   :  { %v299_v10 = vadd.f32 %v287_v8, %v1339_v1 }
 0x149   :  { %307 = vrot.lane.b32.xlu0 %v299_v10, %s1283_s9 }
 0x14a   :  { %v291_v13 = vpop.permute.xlu1 %290  ;;  %v289_v14 = vpop.permute.xlu0 %288 }
 0x14b   :  { %v302_v16 = vadd.f32 %v291_v13, %v1345_v2  ;;  %v294_v33 = vsel %vm292_vm9, %v289_v14, %v291_v13  ;;  %v293_v40 = vsel %vm292_vm9, %v287_v8, %v289_v14 }
 0x14c   :  { %v301_v39 = vadd.f32 %v294_v33, %v1337_v0  ;;  %v300_v44 = vadd.f32 %v293_v40, %v1347_v3 }
 0x14d   :  { %313 = vrot.lane.b32.xlu1 %v302_v16, %s1283_s9  ;;  %159 = vrot.lane.b32.xlu0 %v150_v15, %s1281_s3 }
 0x14e   :  { %v360_v22 = vpop.permute.xlu1 %359  ;;  %v358_v24 = vpop.permute.xlu0 %357 }
 0x14f   :  { %v370_v47 = vadd.f32 %v358_v24, %v1339_v1  ;;  %v364_v17 = vsel %vm363_vm10, %v358_v24, %v360_v22 }
 0x150   :  { %v371_v19 = vadd.f32 %v364_v17, %v1347_v3 }
 0x151   :  { %161 = vrot.lane.b32.xlu1 %v151_v25, %s1281_s3  ;;  %232 = vrot.lane.b32.xlu0 %v222_v26, %s1280_s1 }
 0x152   :  { %v429_v34 = vpop.permute.xlu1 %428  ;;  %v362_v35 = vpop.permute.xlu0 %361 }
 0x153   :  { %v365_v48 = vsel %vm363_vm10, %v360_v22, %v362_v35  ;;  %v373_v52 = vadd.f32 %v362_v35, %v1345_v2  ;;  %v441_v57 = vadd.f32 %v429_v34, %v1339_v1  ;;  %v1058_v35 = vmul.f32 %v1056_v27, %v1347_v3 }
 0x154   :  { %v372_v50 = vadd.f32 %v365_v48, %v1337_v0 }
 0x155   :  { %230 = vrot.lane.b32.xlu1 %v221_v38, %s1280_s1  ;;  %311 = vrot.lane.b32.xlu0 %v301_v39, %s1283_s9  ;;  %v1059_v38 = vmul.f32 %v1056_v27, %v1337_v0  ;;  %v1060_v39 = vmul.f32 %v1056_v27, %v1345_v2 }
 0x156   :  { %v433_v42 = vpop.permute.xlu1 %432  ;;  %v431_v43 = vpop.permute.xlu0 %430 }
 0x157   :  { %v435_v58 = vsel %vm434_vm11, %v429_v34, %v431_v43  ;;  %v436_v59 = vsel %vm434_vm11, %v431_v43, %v433_v42  ;;  %v444_v5 = vadd.f32 %v433_v42, %v1345_v2  ;;  %v1057_v34 = vmul.f32 %v1056_v27, %v1339_v1 }
 0x158   :  { %v442_v63 = vadd.f32 %v435_v58, %v1347_v3  ;;  %v443_v4 = vadd.f32 %v436_v59, %v1337_v0 }
 0x159   :  { %324 = vrot.lane.b32.xlu0 %v1339_v1, %s1295_s19  ;;  %309 = vrot.lane.b32.xlu1 %v300_v44, %s1283_s9  ;;  %v76_v44 = vld [vmem:[#allocation7] ss:$8 sm:$0x7] }
 0x15a   :  { %v731_v45 = vpop.permute.xlu1 %730  ;;  %v729_v46 = vpop.permute.xlu0 %728  ;;  %v81_v17 = vrot.slane %v76_v44, %v1421_v36  ;;  %v85_v48 = vrot.slane %v76_v44, %v1423_v37 }
 0x15d   :  { %328 = vrot.lane.b32.xlu0 %v1337_v0, %s1295_s19  ;;  %326 = vrot.lane.b32.xlu1 %v1347_v3, %s1295_s19 }
 0x15e   :  { %v800_v12 = vpop.permute.xlu1 %799  ;;  %v733_v49 = vpop.permute.xlu0 %732 }
 0x15f   :  { %v736_v7 = vsel %vm734_vm12, %v731_v45, %v733_v49  ;;  %v744_v10 = vadd.f32 %v733_v49, %v1345_v2  ;;  %v812_v11 = vadd.f32 %v800_v12, %v1339_v1 }
 0x161   :  { %330 = vrot.lane.b32.xlu1 %v1345_v2, %s1295_s19  ;;  %378 = vrot.lane.b32.xlu0 %v370_v47, %s1295_s19 }
 0x162   :  { %v804_v28 = vpop.permute.xlu1 %803  ;;  %v802_v51 = vpop.permute.xlu0 %801 }
 0x163   :  { %v806_v13 = vsel %vm805_vm13, %v800_v12, %v802_v51  ;;  %v807_v14 = vsel %vm805_vm13, %v802_v51, %v804_v28  ;;  %v815_v18 = vadd.f32 %v804_v28, %v1345_v2 }
 0x164   :  { %v813_v15 = vadd.f32 %v806_v13, %v1347_v3  ;;  %v814_v16 = vadd.f32 %v807_v14, %v1337_v0 }
 0x165   :  { %380 = vrot.lane.b32.xlu1 %v371_v19, %s1295_s19  ;;  %382 = vrot.lane.b32.xlu0 %v372_v50, %s1295_s19  ;;  %v94_v50 = vadd.f32 %v85_v48, %v1347_v3 }
 0x166   :  { %v1547_v53 = vpop.permute.xlu1 %872  ;;  %v1549_v54 = vpop.permute.xlu0 %870 }
 0x167   :  { %v883_v21 = vadd.f32 %v1549_v54, %v1339_v1  ;;  %v877_v22 = vsel %vm876_vm14, %v1549_v54, %v1547_v53 }
 0x168   :  { %v884_v25 = vadd.f32 %v877_v22, %v1347_v3 }
 0x169   :  { %384 = vrot.lane.b32.xlu1 %v373_v52, %s1295_s19  ;;  %395 = vrot.lane.b32.xlu0 %v1339_v1, %s1296_s20 }
 0x16a   :  { %v256_v32 = vpop.permute.xlu1 %255  ;;  %v1553_v29 = vpop.permute.xlu0 %874 }
 0x16b   :  { %v262_v55 = vsel %vm261_vm3, %v1514_v9, %v256_v32  ;;  %v743_v9 = vadd.f32 %v736_v7, %v1337_v0  ;;  %v878_v24 = vsel %vm876_vm14, %v1547_v53, %v1553_v29  ;;  %v886_v33 = vadd.f32 %v1553_v29, %v1345_v2 }
 0x16c   :  { %v1558_v56 = vadd.f32 %v262_v55, %v1399_v30  ;;  %v885_v26 = vadd.f32 %v878_v24, %v1337_v0  ;;  %v97_v53 = vmax.f32 %v94_v50, -1e+30 }
 0x16d   :  { %397 = vrot.lane.b32.xlu1 %v1347_v3, %s1296_s20  ;;  %399 = vrot.lane.b32.xlu0 %v1337_v0, %s1296_s20 }
 0x16e   :  { %v260_v60 = vpop.permute.xlu1 %259  ;;  %v258_v61 = vpop.permute.xlu0 %257 }
 0x16f   :  { %v263_v20 = vsel %vm261_vm3, %v256_v32, %v258_v61  ;;  %v264_v62 = vsel %vm261_vm3, %v258_v61, %v260_v60 }
 0x170   :  { %v1566_v6 = vadd.f32 %v263_v20, %v1383_v23  ;;  %v1569_v30 = vadd.f32 %v264_v62, %v1401_v31  ;;  %v741_v23 = vadd.f32 %v729_v46, %v1339_v1  ;;  %v735_v31 = vsel %vm734_vm12, %v729_v46, %v731_v45 }
 0x171   :  { %401 = vrot.lane.b32.xlu1 %v1345_v2, %s1296_s20  ;;  %449 = vrot.lane.b32.xlu0 %v441_v57, %s1296_s20  ;;  %v742_v8 = vadd.f32 %v735_v31, %v1347_v3  ;;  %v89_v45 = vrot.slane %v76_v44, %v1430_v41 }
 0x173   :  { %v95_v12 = vadd.f32 %v89_v45, %v1337_v0 }
 0x175   :  { %453 = vrot.lane.b32.xlu0 %v443_v4, %s1296_s20  ;;  %451 = vrot.lane.b32.xlu1 %v442_v63, %s1296_s20  ;;  %v98_v51 = vmax.f32 %v95_v12, -1e+30 }
 0x179   :  { %695 = vrot.lane.b32.xlu0 %v1339_v1, %s1286_s10  ;;  %455 = vrot.lane.b32.xlu1 %v444_v5, %s1296_s20 }
 0x17d   :  { %699 = vrot.lane.b32.xlu0 %v1337_v0, %s1286_s10  ;;  %697 = vrot.lane.b32.xlu1 %v1347_v3, %s1286_s10 }
 0x181   :  { %701 = vrot.lane.b32.xlu1 %v1345_v2, %s1286_s10  ;;  %749 = vrot.lane.b32.xlu0 %v741_v23, %s1286_s10 }
 0x185   :  { %751 = vrot.lane.b32.xlu1 %v742_v8, %s1286_s10  ;;  %753 = vrot.lane.b32.xlu0 %v743_v9, %s1286_s10 }
 0x189   :  { %755 = vrot.lane.b32.xlu1 %v744_v10, %s1286_s10  ;;  %766 = vrot.lane.b32.xlu0 %v1339_v1, %s1297_s21 }
 0x18d   :  { %768 = vrot.lane.b32.xlu1 %v1347_v3, %s1297_s21  ;;  %770 = vrot.lane.b32.xlu0 %v1337_v0, %s1297_s21 }
 0x191   :  { %772 = vrot.lane.b32.xlu1 %v1345_v2, %s1297_s21  ;;  %820 = vrot.lane.b32.xlu0 %v812_v11, %s1297_s21 }
 0x195   :  { %824 = vrot.lane.b32.xlu0 %v814_v16, %s1297_s21  ;;  %822 = vrot.lane.b32.xlu1 %v813_v15, %s1297_s21 }
 0x199   :  { %837 = vrot.lane.b32.xlu0 %v1339_v1, %s1298_s22  ;;  %826 = vrot.lane.b32.xlu1 %v815_v18, %s1297_s21 }
 0x19d   :  { %841 = vrot.lane.b32.xlu0 %v1337_v0, %s1298_s22  ;;  %839 = vrot.lane.b32.xlu1 %v1347_v3, %s1298_s22 }
 0x1a1   :  { %843 = vrot.lane.b32.xlu1 %v1345_v2, %s1298_s22  ;;  %891 = vrot.lane.b32.xlu0 %v883_v21, %s1298_s22  ;;  %v93_v2 = vadd.f32 %v81_v17, %v1339_v1 }
 0x1a3   :  { %v96_v52 = vmax.f32 %v93_v2, -1e+30 }
 0x1a5   :  { %893 = vrot.lane.b32.xlu1 %v884_v25, %s1298_s22  ;;  %895 = vrot.lane.b32.xlu0 %v885_v26, %s1298_s22 }
 0x1a9   :  { %897 = vrot.lane.b32.xlu1 %v886_v33, %s1298_s22  ;;  %1065 = vrot.lane.b32.xlu0 %v1057_v34, %s1295_s19 }
 0x1ad   :  { %1067 = vrot.lane.b32.xlu1 %v1058_v35, %s1295_s19  ;;  %1069 = vrot.lane.b32.xlu0 %v1059_v38, %s1295_s19 }
 0x1af   :  { %v158_v42 = vpop.permute.xlu1 %157 }
 0x1b1   :  { %1071 = vrot.lane.b32.xlu1 %v1060_v39, %s1295_s19 }
 0x1b3   :  { %v164_v40 = vpop.permute.xlu0 %163 }
 0x1b7   :  { %v229_v43 = vpop.permute.xlu0 %228  ;;  %v235_v46 = vpop.permute.xlu1 %234 }
 0x1bb   :  { %v308_v47 = vpop.permute.xlu0 %307 }
 0x1bf   :  { %v314_v49 = vpop.permute.xlu1 %313  ;;  %v160_v19 = vpop.permute.xlu0 %159 }
 0x1c0   :  { %v165_v28 = vsel %vm111_vm1, %v158_v42, %v160_v19 }
 0x1c1   :  { %v171_v29 = vmax.f32 %v96_v52, %v165_v28 }
 0x1c3   :  { %v162_v41 = vpop.permute.xlu1 %161  ;;  %v233_v54 = vpop.permute.xlu0 %232 }
 0x1c4   :  { %v166_v32 = vsel %vm111_vm1, %v160_v19, %v162_v41  ;;  %v167_v36 = vsel %vm111_vm1, %v162_v41, %v164_v40  ;;  %v238_v37 = vsel %vm182_vm0, %v233_v54, %v235_v46  ;;  %vm774_vm1 = vcmask 744448  }
 0x1c5   :  { %v173_v0 = vmax.f32 %v98_v51, %v167_v36  ;;  %v172_v55 = vmax.f32 %v97_v53, %v166_v32 }
 0x1c7   :  { %v244_v57 = vmax.f32 %v173_v0, %v238_v37  ;;  %v231_v1 = vpop.permute.xlu1 %230  ;;  %v312_v58 = vpop.permute.xlu0 %311 }
 0x1c8   :  { %v236_v3 = vsel %vm182_vm0, %v229_v43, %v231_v1  ;;  %v237_v59 = vsel %vm182_vm0, %v231_v1, %v233_v54  ;;  %v317_v60 = vsel %vm261_vm3, %v312_v58, %v314_v49  ;;  %vm403_vm0 = vcmask 883712  }
 0x1c9   :  { %v242_v61 = vmax.f32 %v171_v29, %v236_v3  ;;  %v243_v20 = vmax.f32 %v172_v55, %v237_v59  ;;  %v1634_v62 = vmax.f32 %v244_v57, %v317_v60 }
 0x1cb   :  { %v310_v63 = vpop.permute.xlu1 %309  ;;  %v325_v4 = vpop.permute.xlu0 %324 }
 0x1cc   :  { %v315_v5 = vsel %vm261_vm3, %v308_v47, %v310_v63  ;;  %v316_v23 = vsel %vm261_vm3, %v310_v63, %v312_v58 }
 0x1cd   :  { %v1638_v31 = vmax.f32 %v242_v61, %v315_v5  ;;  %v1640_v7 = vmax.f32 %v243_v20, %v316_v23 }
 0x1cf   :  { %v327_v8 = vpop.permute.xlu1 %326  ;;  %v329_v9 = vpop.permute.xlu0 %328 }
 0x1d0   :  { %v333_v10 = vsel %vm332_vm15, %v325_v4, %v327_v8  ;;  %v334_v11 = vsel %vm332_vm15, %v327_v8, %v329_v9 }
 0x1d1   :  { %v1645_v13 = vadd.f32 %v333_v10, %v1558_v56  ;;  %v1648_v14 = vadd.f32 %v334_v11, %v1566_v6 }
 0x1d3   :  { %v331_v15 = vpop.permute.xlu1 %330  ;;  %v379_v16 = vpop.permute.xlu0 %378 }
 0x1d4   :  { %v335_v18 = vsel %vm332_vm15, %v329_v9, %v331_v15 }
 0x1d5   :  { %v1652_v21 = vadd.f32 %v335_v18, %v1569_v30  ;;  %v1697_v18 = vstv %s1111_s25 }
 0x1d7   :  { %v381_v22 = vpop.permute.xlu1 %380  ;;  %v383_v24 = vpop.permute.xlu0 %382 }
 0x1d8   :  { %v386_v8 = vsel %vm332_vm15, %v379_v16, %v381_v22  ;;  %v387_v9 = vsel %vm332_vm15, %v381_v22, %v383_v24 }
 0x1db   :  { %v385_v25 = vpop.permute.xlu1 %384  ;;  %v396_v26 = vpop.permute.xlu0 %395 }
 0x1dc   :  { %v388_v11 = vsel %vm332_vm15, %v383_v24, %v385_v25  ;;  %v392_v24 = vmax.f32 %v1638_v31, %v386_v8  ;;  %v393_v25 = vmax.f32 %v1640_v7, %v387_v9 }
 0x1df   :  { %v398_v27 = vpop.permute.xlu1 %397  ;;  %v1654_v33 = vpop.permute.xlu0 %399 }
 0x1e0   :  { %v404_v23 = vsel %vm403_vm0, %v396_v26, %v398_v27  ;;  %v405_v10 = vsel %vm403_vm0, %v398_v27, %v1654_v33 }
 0x1e1   :  { %v410_v26 = vadd.f32 %v404_v23, %v1645_v13  ;;  %v1048_v23 = vstv %s1717_s27 }
 0x1e3   :  { %v402_v34 = vpop.permute.xlu1 %401  ;;  %v450_v56 = vpop.permute.xlu0 %449 }
 0x1e4   :  { %v406_v16 = vsel %vm403_vm0, %v1654_v33, %v402_v34 }
 0x1e7   :  { %v1656_v35 = vpop.permute.xlu1 %451  ;;  %v1658_v6 = vpop.permute.xlu0 %453 }
 0x1e8   :  { %v457_v22 = vsel %vm403_vm0, %v450_v56, %v1656_v35  ;;  %v458_v13 = vsel %vm403_vm0, %v1656_v35, %v1658_v6  ;;  %v412_v56 = vadd.f32 %v406_v16, %v1652_v21 }
 0x1e9   :  { %v463_v31 = vmax.f32 %v392_v24, %v457_v22 }
 0x1eb   :  { %v1660_v38 = vpop.permute.xlu1 %455  ;;  %v696_v39 = vpop.permute.xlu0 %695 }
 0x1ec   :  { %v1662_v40 = vpop.f32.mrf.mxu0  ;;  %v1664_v30 = vpop.f32.mrf.mxu1 }
 0x1ee   :  { %v1666_v42 = vpop.f32.mrf.mxu0  ;;  %v1130_v43 = vpop.f32.mrf.mxu1 }
 0x1ef   :  { %v698_v44 = vpop.permute.xlu1 %697  ;;  %v1668_v45 = vpop.permute.xlu0 %699 }
 0x1f0   :  { %v559_v46 = vpop.f32.mrf.mxu0  ;;  %v599_v47 = vpop.f32.mrf.mxu1  ;;  %v704_v15 = vsel %vm703_vm6, %v696_v39, %v698_v44  ;;  %v705_v27 = vsel %vm703_vm6, %v698_v44, %v1668_v45  ;;  %v411_v39 = vadd.f32 %v405_v10, %v1648_v14 }
 0x1f1   :  { %v1699_v47 = vstv %s1039_s26  ;;  %v710_v33 = vadd.f32 %v704_v15, %v410_v26 }
 0x1f2   :  { %v560_v17 = vpop.f32.mrf.mxu0  ;;  %v1131_v48 = vpop.f32.mrf.mxu1  ;;  %v711_v44 = vadd.f32 %v705_v27, %v411_v39 }
 0x1f3   :  { %v702_v12 = vpop.permute.xlu1 %701  ;;  %v1670_v49 = vpop.permute.xlu0 %749  ;;  %v394_v48 = vmax.f32 %v1634_v62, %v388_v11 }
 0x1f4   :  { %v648_v19 = vpop.f32.mrf.mxu0  ;;  %v1672_v2 = vpop.f32.mrf.mxu1  ;;  %v706_v7 = vsel %vm703_vm6, %v1668_v45, %v702_v12  ;;  %v459_v45 = vsel %vm403_vm0, %v1658_v6, %v1660_v38 }
 0x1f5   :  { %v649_v62 = vadd.f32 %v648_v19, %v1662_v40 }
 0x1f6   :  { %v1674_v50 = vpop.f32.mrf.mxu0  ;;  %v1138_v28 = vpop.f32.mrf.mxu1 }
 0x1f7   :  { %v1676_v51 = vpop.permute.xlu1 %751  ;;  %v1678_v52 = vpop.permute.xlu0 %753 }
 0x1f8   :  { %v652_v53 = vpop.f32.mrf.mxu0  ;;  %v692_v41 = vpop.f32.mrf.mxu1  ;;  %v758_v40 = vsel %vm703_vm6, %v1676_v51, %v1678_v52 }
 0x1fa   :  { %v653_v54 = vpop.f32.mrf.mxu0  ;;  %v1139_v32 = vpop.f32.mrf.mxu1 }
 0x1fb   :  { %v1680_v36 = vpop.permute.xlu1 %755  ;;  %v767_v37 = vpop.permute.xlu0 %766  ;;  %v464_v54 = vmax.f32 %v393_v25, %v458_v13  ;;  %v757_v32 = vsel %vm703_vm6, %v1670_v49, %v1676_v51 }
 0x1fc   :  { %v1682_v0 = vpop.f32.mrf.mxu0  ;;  %v1684_v29 = vpop.f32.mrf.mxu1 }
 0x1fd   :  { %v1030_v38 = vadd.f32 %v1682_v0, %v649_v62 }
 0x1fe   :  { %v1686_v55 = vpop.f32.mrf.mxu0  ;;  %v1146_v57 = vpop.f32.mrf.mxu1 }
 0x1ff   :  { %v769_v1 = vpop.permute.xlu1 %768  ;;  %v771_v58 = vpop.permute.xlu0 %770  ;;  %v712_v57 = vadd.f32 %v706_v7, %v412_v56 }
 0x200   :  { %v987_v3 = vpop.f32.mrf.mxu0  ;;  %v1027_v59 = vpop.f32.mrf.mxu1  ;;  %v775_v17 = vsel %vm774_vm1, %v767_v37, %v769_v1  ;;  %v776_v34 = vsel %vm774_vm1, %v769_v1, %v771_v58  ;;  %v651_v37 = vadd.f32 %v1674_v50, %v1666_v42  ;;  %v690_v1 = vadd.f32 %v1672_v2, %v1664_v30 }
 0x201   :  { %v781_v53 = vadd.f32 %v775_v17, %v710_v33  ;;  %v782_v21 = vadd.f32 %v776_v34, %v711_v44  ;;  %v763_v59 = vmax.f32 %v463_v31, %v757_v32 }
 0x202   :  { %v988_v60 = vpop.f32.mrf.mxu0  ;;  %v1147_v61 = vpop.f32.mrf.mxu1  ;;  %v1031_v2 = vadd.f32 %v1686_v55, %v651_v37  ;;  %v1032_v26 = vadd.f32 %v1684_v29, %v690_v1 }
 0x203   :  { %v773_v20 = vpop.permute.xlu1 %772  ;;  %v821_v63 = vpop.permute.xlu0 %820  ;;  %v759_v60 = vsel %vm703_vm6, %v1678_v52, %v1680_v36  ;;  %v465_v61 = vmax.f32 %v394_v48, %v459_v45  ;;  %v1035_v52 = vmul.f32 %v1697_v18, %v1030_v38 }
 0x204   :  { %v777_v12 = vsel %vm774_vm1, %v771_v58, %v773_v20  ;;  %v764_v58 = vmax.f32 %v464_v54, %v758_v40  ;;  %v1037_v33 = vmul.f32 %v1697_v18, %v1032_v26 }
 0x205   :  { %v783_v30 = vadd.f32 %v777_v12, %v712_v57  ;;  %v765_v15 = vmax.f32 %v465_v61, %v759_v60 }
 0x207   :  { %v823_v4 = vpop.permute.xlu1 %822  ;;  %v1688_v5 = vpop.permute.xlu0 %824 }
 0x208   :  { %v828_v49 = vsel %vm774_vm1, %v821_v63, %v823_v4  ;;  %v829_v6 = vsel %vm774_vm1, %v823_v4, %v1688_v5 }
 0x209   :  { %v834_v20 = vmax.f32 %v763_v59, %v828_v49  ;;  %v835_v8 = vmax.f32 %v764_v58, %v829_v6 }
 0x20b   :  { %v827_v43 = vpop.permute.xlu1 %826  ;;  %v838_v46 = vpop.permute.xlu0 %837 }
 0x20c   :  { %v830_v4 = vsel %vm774_vm1, %v1688_v5, %v827_v43 }
 0x20d   :  { %v836_v27 = vmax.f32 %v765_v15, %v830_v4 }
 0x20f   :  { %v840_v14 = vpop.permute.xlu1 %839  ;;  %v842_v28 = vpop.permute.xlu0 %841 }
 0x210   :  { %v846_v41 = vsel %vm845_vm2, %v838_v46, %v840_v14  ;;  %v847_v35 = vsel %vm845_vm2, %v840_v14, %v842_v28  ;;  %v1036_v46 = vmul.f32 %v1697_v18, %v1031_v2 }
 0x211   :  { %v852_v19 = vadd.f32 %v846_v41, %v781_v53  ;;  %v853_v3 = vadd.f32 %v847_v35, %v782_v21 }
 0x213   :  { %v844_v42 = vpop.permute.xlu1 %843  ;;  %v892_v50 = vpop.permute.xlu0 %891  ;;  %v1041_v63 = vmul.f32 %v1699_v47, %v852_v19  ;;  %v1042_v0 = vmul.f32 %v1699_v47, %v853_v3 }
 0x214   :  { %v848_v51 = vsel %vm845_vm2, %v842_v28, %v844_v42 }
 0x215   :  { %v854_v9 = vadd.f32 %v848_v51, %v783_v30  ;;  %v1044_v5 = vadd.f32 %v1041_v63, %v1035_v52  ;;  %v1045_v48 = vadd.f32 %v1042_v0, %v1036_v46 }
 0x217   :  { %v894_v10 = vpop.permute.xlu1 %893  ;;  %v896_v11 = vpop.permute.xlu0 %895  ;;  %v1043_v43 = vmul.f32 %v1699_v47, %v854_v9 }
 0x218   :  { %v899_v36 = vsel %vm845_vm2, %v892_v50, %v894_v10  ;;  %v900_v55 = vsel %vm845_vm2, %v894_v10, %v896_v11 }
 0x219   :  { %v905_v16 = vmax.f32 %v834_v20, %v899_v36  ;;  %v906_v22 = vmax.f32 %v835_v8, %v900_v55  ;;  %v1046_v14 = vadd.f32 %v1043_v43, %v1037_v33 }
 0x21b   :  { %v1049_v24 = vmul.f32 %v1048_v23, %v905_v16  ;;  %v1050_v25 = vmul.f32 %v1048_v23, %v906_v22  ;;  %v898_v39 = vpop.permute.xlu1 %897  ;;  %v1066_v17 = vpop.permute.xlu0 %1065 }
 0x21c   :  { %v901_v13 = vsel %vm845_vm2, %v896_v11, %v898_v39 }
 0x21d   :  { %v907_v34 = vmax.f32 %v836_v27, %v901_v13  ;;  %v1052_v56 = vadd.f32 %v1049_v24, %v1044_v5  ;;  %v1053_v31 = vadd.f32 %v1050_v25, %v1045_v48 }
 0x21f   :  { %v1051_v44 = vmul.f32 %v1048_v23, %v907_v34  ;;  %v1068_v29 = vpop.permute.xlu1 %1067  ;;  %v1070_v7 = vpop.permute.xlu0 %1069 }
 0x220   :  { %v1073_v28 = vsel %vm332_vm15, %v1066_v17, %v1068_v29  ;;  %v1074_v47 = vsel %vm332_vm15, %v1068_v29, %v1070_v7 }
 0x221   :  { %v1079_v53 = vadd.f32 %v1073_v28, %v1052_v56  ;;  %v1080_v62 = vadd.f32 %v1074_v47, %v1053_v31  ;;  %v1054_v41 = vadd.f32 %v1051_v44, %v1046_v14 }
 0x223   :  { %1082 = vst [vmem:[#allocation10] sm:$0xff] %v1079_v53  ;;  %1083 = vst [vmem:[#allocation10 + $0x8] sm:$0xff] %v1080_v62  ;;  %v1072_v35 = vpop.permute.xlu1 %1071 }
 0x224   :  { %v1075_v18 = vsel %vm332_vm15, %v1070_v7, %v1072_v35 }
 0x225   :  { %v1081_v54 = vadd.f32 %v1075_v18, %v1054_v41 }
 0x227   :  { %1084 = vst [vmem:[#allocation10 + $0x10] sm:$0xff] %v1081_v54 }
 0x228   :  { %1255 = shalt.err (!%p1252_p5)
}
 0x229   :  { %1094 = dma.vmem_to_hbm [thread:$0]  %s1092_s29, 384, %s1771_s4, [#allocation4]  }
 0x22a   :  { %1270 = dma.done.wait [#allocation4], 384  }
 0x22b   :  { %1271 = vsyncadd [#allocation4], 4294966912 }
 0x22c   :  { %1098 = vsyncpa [#allocation3], 1 }
 0x22d   :  { %1099 = vsyncpa [#allocation8], 1 }
 0x22e   :  { %1100 = vsyncpa [#allocation4], 1 }
 0x22f   :  { %1101 = vsyncpa [#allocation5], 1 }

</bundles_post_ra>
